<compile_context>
chip_gen: v7x
topology: tpu7x:2x2x1
jax: 0.10.0
libtpu: 0.0.40
codegen_flags: <defaults>
</compile_context>

<pallas_src>
import jax
import jax.numpy as jnp
from jax.experimental import pallas as pl
from jax.experimental.pallas import tpu as pltpu


def mlp_kernel(xT_ref, w1_ref, b1_ref, w2_ref, b2_ref, w3_ref, b3_ref, o_ref):
    # xT_ref: (F, block_b) bf16   — batch on lanes
    # w1_ref: (H, F)  bf16        — PyTorch layout (out, in)
    # b1_ref: (H, 1)  f32
    # w2_ref: (H, H)  bf16
    # b2_ref: (H, 1)  f32
    # w3_ref: (H, 1)  f32         — head weights, used on VPU (not MXU)
    # b3_ref: (1,)    f32 in SMEM
    # o_ref : (1, block_b) f32    — lane-dense output row

    # Layer 1: Linear(F, H) + ReLU   (Dropout -> identity at inference)
    h = jnp.dot(w1_ref[...], xT_ref[...], preferred_element_type=jnp.float32)  # (H, B)
    h = jnp.maximum(h + b1_ref[...], 0.0)

    # Layer 2: Linear(H, H) + ReLU
    h = jnp.dot(w2_ref[...], h.astype(w2_ref.dtype),
                preferred_element_type=jnp.float32)                            # (H, B)
    h = jnp.maximum(h + b2_ref[...], 0.0)

    # Layer 3: Linear(H, 1) as VPU multiply + cross-sublane reduction
    y = jnp.sum(h * w3_ref[...], axis=0, keepdims=True) + b3_ref[0]            # (1, B)
    o_ref[...] = y.astype(o_ref.dtype)


def net_forward(x, params, *, block_b=512):
    """x: (B, F) float32 -> (B, 1) float32. Fused 3-layer MLP in one Pallas kernel."""
    (w1, b1), (w2, b2), (w3, b3) = params   # PyTorch layout: W (out, in), b (out,)
    B, F = x.shape
    H = w1.shape[0]

    # Pad batch up to a tile multiple so arbitrary B works (padding rows are junk,
    # sliced off at the end).
    Bp = pl.cdiv(B, block_b) * block_b
    if Bp != B:
        x = jnp.pad(x, ((0, Bp - B), (0, 0)))

    # Layout plumbing at the XLA level (outside the kernel):
    #   - batch becomes the lane axis: x -> (F, Bp), output emitted as (1, Bp)
    #   - MXU operands cast to bf16; biases / head weights stay f32 for the epilogue
    xT = x.T.astype(jnp.bfloat16)          # (F, Bp)
    w1_bf = w1.astype(jnp.bfloat16)        # (H, F)
    w2_bf = w2.astype(jnp.bfloat16)        # (H, H)
    b1c = b1.reshape(H, 1).astype(jnp.float32)
    b2c = b2.reshape(H, 1).astype(jnp.float32)
    w3c = w3.reshape(H, 1).astype(jnp.float32)
    b3v = b3.reshape(1).astype(jnp.float32)

    grid = (Bp // block_b,)
    out = pl.pallas_call(
        mlp_kernel,
        out_shape=jax.ShapeDtypeStruct((1, Bp), jnp.float32),
        grid_spec=pltpu.PrefetchScalarGridSpec(
            num_scalar_prefetch=0,
            grid=grid,
            in_specs=[
                # streaming batch tile of the (transposed) input
                pl.BlockSpec((F, block_b), lambda i: (0, i)),
                # weights / biases: full arrays, resident across all grid steps
                pl.BlockSpec((H, F), lambda i: (0, 0)),
                pl.BlockSpec((H, 1), lambda i: (0, 0)),
                pl.BlockSpec((H, H), lambda i: (0, 0)),
                pl.BlockSpec((H, 1), lambda i: (0, 0)),
                pl.BlockSpec((H, 1), lambda i: (0, 0)),
                # single scalar bias lives in SMEM
                pl.BlockSpec(memory_space=pltpu.MemorySpace.SMEM),
            ],
            # lane-dense output row per batch tile
            out_specs=pl.BlockSpec((1, block_b), lambda i: (0, i)),
        ),
        compiler_params=pltpu.CompilerParams(
            dimension_semantics=("parallel",),
        ),
    )(xT, w1_bf, b1c, w2_bf, b2c, w3c, b3v)
    return out.reshape(Bp, 1)[:B]


def init_params(key, in_features, hidden):
    """Deterministic PyTorch-style Linear init: U(-1/sqrt(fan_in), 1/sqrt(fan_in)).

    Weights stored in PyTorch layout: W (out_features, in_features), b (out_features,).
    """
    def linear(key, fan_in, fan_out):
        kw, kb = jax.random.split(key)
        bound = 1.0 / jnp.sqrt(jnp.float32(fan_in))
        w = jax.random.uniform(kw, (fan_out, fan_in), jnp.float32, -bound, bound)
        b = jax.random.uniform(kb, (fan_out,), jnp.float32, -bound, bound)
        return w, b

    k1, k2, k3 = jax.random.split(key, 3)
    return (linear(k1, in_features, hidden),
            linear(k2, hidden, hidden),
            linear(k3, hidden, 1))


def net_forward_ref(x, params):
    (w1, b1), (w2, b2), (w3, b3) = params
    h = jnp.maximum(x @ w1.T + b1, 0.0)
    h = jnp.maximum(h @ w2.T + b2, 0.0)
    return h @ w3.T + b3


if __name__ == "__main__":
    key = jax.random.PRNGKey(0)
    kx, kp = jax.random.split(key)

    F = 20            # number of input features (the 20 selected dataframe columns)
    H = 32            # hidden width ("study.best_params['dropout_rate']" stand-in)
    block_b = 512     # batch tile (lane axis, multiple of 128)
    B = 2 * block_b   # >= 2 grid steps so both v7x TensorCores get work

    x = jax.random.normal(kx, (B, F), dtype=jnp.float32)
    params = init_params(kp, F, H)

    y = net_forward(x, params, block_b=block_b)
    y = jax.block_until_ready(y)

    # correctness check against pure-JAX f32 reference
    # (bf16 MXU operands inside the kernel -> loosened tolerance)
    y_ref = net_forward_ref(x, params)
    assert y.shape == (B, 1)
    assert jnp.allclose(y, y_ref, atol=5e-2, rtol=5e-2), "mismatch vs reference"

    print("KERNEL_OK")
</pallas_src>

<mosaic_0001>
module attributes {stable_mosaic.version = 11 : i64} {
  func.func @mlp_kernel(%arg0: i32, %arg1: memref<20x512xbf16, #tpu.memory_space<vmem>>, %arg2: memref<32x20xbf16, #tpu.memory_space<vmem>>, %arg3: memref<32x1xf32, #tpu.memory_space<vmem>>, %arg4: memref<32x32xbf16, #tpu.memory_space<vmem>>, %arg5: memref<32x1xf32, #tpu.memory_space<vmem>>, %arg6: memref<32x1xf32, #tpu.memory_space<vmem>>, %arg7: memref<1xf32, #tpu.memory_space<smem>>, %arg8: memref<1x512xf32, #tpu.memory_space<vmem>>) attributes {dimension_semantics = [#tpu.dimension_semantics<parallel>], iteration_bounds = array<i64: 2>, scalar_prefetch = 0 : i64, scratch_operands = 0 : i64, tpu.core_type = #tpu.core_type<tc>, window_params = [{transform_indices = @transform_0, window_bounds = array<i64: 20, 512>}, {pipeline_mode = #tpu.pipeline_mode<synchronous>, transform_indices = @transform_1, window_bounds = array<i64: 32, 20>}, {pipeline_mode = #tpu.pipeline_mode<synchronous>, transform_indices = @transform_2, window_bounds = array<i64: 32, 1>}, {pipeline_mode = #tpu.pipeline_mode<synchronous>, transform_indices = @transform_3, window_bounds = array<i64: 32, 32>}, {pipeline_mode = #tpu.pipeline_mode<synchronous>, transform_indices = @transform_4, window_bounds = array<i64: 32, 1>}, {pipeline_mode = #tpu.pipeline_mode<synchronous>, transform_indices = @transform_5, window_bounds = array<i64: 32, 1>}, {transform_indices = @transform_6, window_bounds = array<i64: 1>}, {transform_indices = @transform_7, window_bounds = array<i64: 1, 512>}]} {
    %c0 = arith.constant 0 : index
    %c0_0 = arith.constant 0 : index
    %0 = vector.load %arg2[%c0, %c0_0] : memref<32x20xbf16, #tpu.memory_space<vmem>>, vector<32x20xbf16>
    %c0_1 = arith.constant 0 : index
    %c0_2 = arith.constant 0 : index
    %1 = vector.load %arg1[%c0_1, %c0_2] : memref<20x512xbf16, #tpu.memory_space<vmem>>, vector<20x512xbf16>
    %cst = arith.constant dense<0.000000e+00> : vector<32x512xf32>
    %2 = tpu.matmul %0, %1, %cst {dimension_numbers = #tpu.dot_dimension_numbers<[1], [0], [0], [1], [0, 0, 1, 1], [], []>} : vector<32x20xbf16>, vector<20x512xbf16>, vector<32x512xf32> -> vector<32x512xf32>
    %c0_3 = arith.constant 0 : index
    %c0_4 = arith.constant 0 : index
    %3 = vector.load %arg3[%c0_3, %c0_4] : memref<32x1xf32, #tpu.memory_space<vmem>>, vector<32x1xf32>
    %4 = vector.broadcast %3 : vector<32x1xf32> to vector<32x512xf32>
    %5 = arith.addf %2, %4 : vector<32x512xf32>
    %cst_5 = arith.constant 0.000000e+00 : f32
    %6 = vector.broadcast %cst_5 : f32 to vector<32x512xf32>
    %7 = arith.maximumf %5, %6 : vector<32x512xf32>
    %c0_6 = arith.constant 0 : index
    %c0_7 = arith.constant 0 : index
    %8 = vector.load %arg4[%c0_6, %c0_7] : memref<32x32xbf16, #tpu.memory_space<vmem>>, vector<32x32xbf16>
    %9 = arith.truncf %7 : vector<32x512xf32> to vector<32x512xbf16>
    %cst_8 = arith.constant dense<0.000000e+00> : vector<32x512xf32>
    %10 = tpu.matmul %8, %9, %cst_8 {dimension_numbers = #tpu.dot_dimension_numbers<[1], [0], [0], [1], [0, 0, 1, 1], [], []>} : vector<32x32xbf16>, vector<32x512xbf16>, vector<32x512xf32> -> vector<32x512xf32>
    %c0_9 = arith.constant 0 : index
    %c0_10 = arith.constant 0 : index
    %11 = vector.load %arg5[%c0_9, %c0_10] : memref<32x1xf32, #tpu.memory_space<vmem>>, vector<32x1xf32>
    %12 = vector.broadcast %11 : vector<32x1xf32> to vector<32x512xf32>
    %13 = arith.addf %10, %12 : vector<32x512xf32>
    %cst_11 = arith.constant 0.000000e+00 : f32
    %14 = vector.broadcast %cst_11 : f32 to vector<32x512xf32>
    %15 = arith.maximumf %13, %14 : vector<32x512xf32>
    %c0_12 = arith.constant 0 : index
    %c0_13 = arith.constant 0 : index
    %16 = vector.load %arg6[%c0_12, %c0_13] : memref<32x1xf32, #tpu.memory_space<vmem>>, vector<32x1xf32>
    %17 = vector.broadcast %16 : vector<32x1xf32> to vector<32x512xf32>
    %18 = arith.mulf %15, %17 : vector<32x512xf32>
    %cst_14 = arith.constant dense<0.000000e+00> : vector<512xf32>
    %19 = vector.multi_reduction <add>, %18, %cst_14 [0] : vector<32x512xf32> to vector<512xf32>
    %20 = vector.shape_cast %19 : vector<512xf32> to vector<1x512xf32>
    %c0_15 = arith.constant 0 : index
    %21 = memref.load %arg7[%c0_15] : memref<1xf32, #tpu.memory_space<smem>>
    %22 = vector.broadcast %21 : f32 to vector<1x512xf32>
    %23 = arith.addf %20, %22 : vector<1x512xf32>
    %c0_16 = arith.constant 0 : index
    %c0_17 = arith.constant 0 : index
    %24 = vector.load %arg8[%c0_16, %c0_17] : memref<1x512xf32, #tpu.memory_space<vmem>>, vector<1x512xf32>
    tpu.vector_store %arg8[%c0_16, %c0_17], %23 {strides = array<i32>} : memref<1x512xf32, #tpu.memory_space<vmem>>, vector<1x512xf32>,
    return
  }
  func.func @transform_0(%arg0: i32) -> (i32, i32) {
    %c0_i32 = arith.constant 0 : i32
    %c0_i32_0 = arith.constant 0 : i32
    return %c0_i32, %arg0 : i32, i32
  }
  func.func @transform_1(%arg0: i32) -> (i32, i32) {
    %c0_i32 = arith.constant 0 : i32
    %c0_i32_0 = arith.constant 0 : i32
    %c0_i32_1 = arith.constant 0 : i32
    return %c0_i32, %c0_i32_0 : i32, i32
  }
  func.func @transform_2(%arg0: i32) -> (i32, i32) {
    %c0_i32 = arith.constant 0 : i32
    %c0_i32_0 = arith.constant 0 : i32
    %c0_i32_1 = arith.constant 0 : i32
    return %c0_i32, %c0_i32_0 : i32, i32
  }
  func.func @transform_3(%arg0: i32) -> (i32, i32) {
    %c0_i32 = arith.constant 0 : i32
    %c0_i32_0 = arith.constant 0 : i32
    %c0_i32_1 = arith.constant 0 : i32
    return %c0_i32, %c0_i32_0 : i32, i32
  }
  func.func @transform_4(%arg0: i32) -> (i32, i32) {
    %c0_i32 = arith.constant 0 : i32
    %c0_i32_0 = arith.constant 0 : i32
    %c0_i32_1 = arith.constant 0 : i32
    return %c0_i32, %c0_i32_0 : i32, i32
  }
  func.func @transform_5(%arg0: i32) -> (i32, i32) {
    %c0_i32 = arith.constant 0 : i32
    %c0_i32_0 = arith.constant 0 : i32
    %c0_i32_1 = arith.constant 0 : i32
    return %c0_i32, %c0_i32_0 : i32, i32
  }
  func.func @transform_6(%arg0: i32) -> i32 {
    %c0_i32 = arith.constant 0 : i32
    %c0_i32_0 = arith.constant 0 : i32
    return %c0_i32 : i32
  }
  func.func @transform_7(%arg0: i32) -> (i32, i32) {
    %c0_i32 = arith.constant 0 : i32
    %c0_i32_0 = arith.constant 0 : i32
    return %c0_i32, %arg0 : i32, i32
  }
}

</mosaic_0001>

<bundles_post_ra>
// kernel: tpu_custom_call.1
= control target key start
LH: loop header
LB: loop body
LE: loop exit
PB: predicated region body
PF: predicated region fallthrough
CT: control target
= control target key end

     0   :  { %s1279_s0 = inlined_call_operand.vmem [shape: bf16[20,1024], index: 0, kind: input, shape index: {}]   ;;  %s1280_s1 = inlined_call_operand.vmem [shape: bf16[32,20], index: 1, kind: input, shape index: {}]   ;;  %s1281_s2 = inlined_call_operand.vmem [shape: f32[32,1], index: 2, kind: input, shape index: {}]   ;;  %s1282_s3 = inlined_call_operand.vmem [shape: bf16[32,32], index: 3, kind: input, shape index: {}]   ;;  %s1283_s4 = inlined_call_operand.vmem [shape: f32[32,1], index: 4, kind: input, shape index: {}]   ;;  %s1284_s5 = inlined_call_operand.vmem [shape: f32[32,1], index: 5, kind: input, shape index: {}]   ;;  %s1285_s6 = inlined_call_operand.<no memory space> [shape: f32[1], index: 6, kind: input, shape index: {}]   ;;  %s1286_s7 = inlined_call_operand.hbm [shape: f32[1,1024], index: 7, kind: output, shape index: {}]  }
   0x1   :  { %12 = sst [smem:[#allocation2]] %s1285_s6 }
   0x2   :  { %13 = vsyncpa [#allocation5], 0 }
   0x3   :  { %15 = vsyncpa [#allocation5 + $0x1], 0  ;;  %s1103_s26 = smov 0   ;;  %s1105_s27 = smov 0  }
   0x4   :  { %s1107_s28 = smov 0   ;;  %s1109_s29 = smov 0  }
   0x5 LB: > { %s897_s6 = sadd.s32 4294967295, %s1055_s29   ;;  %s898_s30 = sadd.s32 4294967294, %s1055_s29   ;;  %s1055_s29 = sphi %s1109_s29, %s1292_s29   ;;  %s1051_s28 = sphi %s1107_s28, %s1291_s28   ;;  %s1047_s27 = sphi %s1105_s27, %s1290_s27   ;;  %s1043_s26 = sphi %s1103_s26, %s1289_s26  }
   0x6   : > { %s1126_s8 = sadd.s32 1, %s1055_s29   ;;  %s28_s9 = sadd.s32 1, %s1051_s28 }
   0x7   : > { %s25_s10 = ssub.s32 %s1055_s29, %s1126_s8  ;;  %p35_p0 = scmp.ne.s32.totalorder %s1051_s28, %s1047_s27 }
   0x8   : > { %p26_p1 = scmp.eq.s32.totalorder %s25_s10, 0  ;;  %p36_p2 = scmp.eq.s32.totalorder %s1055_s29, 0 }
   0x9   : > { %p191_p3 = scmp.eq.s32.totalorder %s897_s6, 1  ;;  %p196_p4 = scmp.ne.s32.totalorder %s1047_s27, %s1043_s26 }
   0xa   : > { %s1139_s11 = scalar_select %p26_p1, %s1051_s28, %s28_s9  }
   0xb   : > { %p37_p5 = por %p36_p2, %p35_p0  ;;  %p1141_p6 = por %p191_p3, %p35_p0 }
   0xc   : > { %p197_p7 = scmp.eq.s32.totalorder %s898_s30, 1  ;;  %p900_p9 = scmp.ge.s32.totalorder %s1055_s29, 2 }
   0xe   : > { %p1145_p8 = por %p197_p7, %p196_p4  ;;  %231 = sbr.rel (%p900_p9) target bundleno = 28 (0x1c), region = 40 }
  0x15   : > { %234 = sbr.rel (!%p37_p5) target bundleno = 28 (0x1c), region = 44  ;;  %s236_s14 = sand.u32 (%p37_p5), 1, %s1051_s28  }
  0x16   : > { %s932_s15 = sshll.u32 (%p37_p5), %s1055_s29, 4  ;;  %s934_s16 = smul.u32 (%p37_p5), 48, %s236_s14 }
  0x17   : > { %s241_s19 = scalar_lea.vmem (%p37_p5), %s1279_s0, %s932_s15 }
  0x18   : > { %v254_v0 = vld [vmem:[%s241_s19] sm:$0xff] (%p37_p5)  ;;  %v256_v1 = vld [vmem:[%s241_s19 + $0x8] sm:$0xff] (%p37_p5)  ;;  %s238_s20 = scalar_lea.vmem (%p37_p5), [#allocation3], %s934_s16 }
  0x19   : > { %v258_v2 = vld [vmem:[%s241_s19 + $0x20] sm:$0xff] (%p37_p5)  ;;  %v260_v3 = vld [vmem:[%s241_s19 + $0x28] sm:$0xff] (%p37_p5)  ;;  %255 = vst [vmem:[%s238_s20] sm:$0xff] (%p37_p5), %v254_v0  ;;  %257 = vst [vmem:[%s238_s20 + $0x8] sm:$0xff] (%p37_p5), %v256_v1 }
  0x1a   : > { %v262_v4 = vld [vmem:[%s241_s19 + $0x40] sm:$0xff] (%p37_p5)  ;;  %v264_v5 = vld [vmem:[%s241_s19 + $0x48] sm:$0xff] (%p37_p5)  ;;  %259 = vst [vmem:[%s238_s20 + $0x10] sm:$0xff] (%p37_p5), %v258_v2  ;;  %261 = vst [vmem:[%s238_s20 + $0x18] sm:$0xff] (%p37_p5), %v260_v3 }
  0x1b   : > { %263 = vst [vmem:[%s238_s20 + $0x20] sm:$0xff] (%p37_p5), %v262_v4  ;;  %265 = vst [vmem:[%s238_s20 + $0x28] sm:$0xff] (%p37_p5), %v264_v5 }
  0x1c PF: > { %p903_p10 = scmp.ge.s32.totalorder %s1055_s29, 1  ;;  %p270_p11 = scmp.lt.s32.totalorder %s1055_s29, 3 }
  0x1e   : > { %p271_p12 = pnand %p903_p10, %p270_p11 }
  0x1f   : > { %s1160_s21 = sand.u32 (!%p271_p12), 1, %s1047_s27   ;;  %v1057_v6 = vmov (!%p271_p12), 0   ;;  %v321_v7 = vld [vmem:[%s1281_s2] sm:$0xff] (!%p271_p12)  ;;  %v322_v8 = vld [vmem:[%s1281_s2 + $0x8] sm:$0xff] (!%p271_p12)  ;;  %v323_v9 = vld [vmem:[%s1281_s2 + $0x10] sm:$0xff] (!%p271_p12)  ;;  %vm392_vm0 = vcmask (!%p271_p12), 1041408  }
  0x20   : > { %274 = sbr.rel (%p271_p12) target bundleno = 546 (0x222), region = 67  ;;  %437 = vmatprep.mubr.bf16.mxu0 (!%p271_p12), %v1057_v6  ;;  %490 = vmatprep.mubr.bf16.mxu1 (!%p271_p12), %v1057_v6  ;;  %v324_v18 = vld [vmem:[%s1281_s2 + $0x18] sm:$0xff] (!%p271_p12)  ;;  %v539_v21 = vld [vmem:[%s1283_s4] sm:$0xff] (!%p271_p12)  ;;  %v540_v24 = vld [vmem:[%s1283_s4 + $0x8] sm:$0xff] (!%p271_p12)  ;;  %vm385_vm1 = vcmask (!%p271_p12), 162816   ;;  %vm573_vm2 = vcmask (!%p271_p12), 261120  }
  0x21   : > { %s935_s22 = smul.u32 (!%p271_p12), 48, %s1160_s21  ;;  %977 = vset.pattern.permute.xlu0 (!%p271_p12), %v1057_v6  ;;  %978 = vset.pattern.permute.xlu1 (!%p271_p12), %v1057_v6  ;;  %v989_v25 = vld [vmem:[%s1280_s1] sm:$0xff] (!%p271_p12)   ;;  %v541_v26 = vld [vmem:[%s1283_s4 + $0x10] sm:$0xff] (!%p271_p12)  ;;  %v542_v27 = vld [vmem:[%s1283_s4 + $0x18] sm:$0xff] (!%p271_p12)  ;;  %s778_s10 = sld [smem:[#allocation2]] (!%p271_p12) }
  0x22   : > { %327 = vperm.xlu0 (!%p271_p12), %977, %v321_v7   ;;  %337 = vperm.xlu1 (!%p271_p12), %978, %v323_v9   ;;  %v702_v28 = vld [vmem:[%s1284_s5] sm:$0xff] (!%p271_p12)  ;;  %v703_v29 = vld [vmem:[%s1284_s5 + $0x8] sm:$0xff] (!%p271_p12)  ;;  %v704_v31 = vld [vmem:[%s1284_s5 + $0x10] sm:$0xff] (!%p271_p12)  ;;  %s933_s15 = sshll.u32 (!%p271_p12), %s897_s6, 6  ;;  %s1059_s6 = smov (!%p271_p12), [#allocation4]  }
  0x23   : > { %s279_s14 = scalar_lea.vmem (!%p271_p12), [#allocation3], %s935_s22  ;;  %v990_v30 = vld [vmem:[%s1280_s1 + $0x8] sm:$0xff] (!%p271_p12)   ;;  %v705_v32 = vld [vmem:[%s1284_s5 + $0x18] sm:$0xff] (!%p271_p12)  ;;  %s1235_s20 = scalar_lea.hbm (!%p271_p12), %s1286_s7, %s933_s15 }
  0x24   : > { %v979_v10 = vld [vmem:[%s279_s14 + $0x4] ss:$16 sps:$4 sm:$0xff] (!%p271_p12)   ;;  %v981_v11 = vld [vmem:[%s279_s14 + $0xc] ss:$16 sps:$4 sm:$0xff] (!%p271_p12)   ;;  %v983_v12 = vld [vmem:[%s279_s14] ss:$16 sps:$4 sm:$0xff] (!%p271_p12)  }
  0x25   : > { %405 = vmatprep.subr.bf16.mxu0 (!%p271_p12), %v979_v10  ;;  %v984_v13 = vld [vmem:[%s279_s14 + $0x8] ss:$16 sps:$4 sm:$0xff] (!%p271_p12)   ;;  %v319_v14 = vld [vmem:[%s279_s14 + $0x20] sm:$0x33] (!%p271_p12)  ;;  %458 = vmatprep.subr.bf16.mxu1 (!%p271_p12), %v981_v11  ;;  %s819_s22 = scalar_lea.sflag (!%p271_p12), [#allocation5], %s1160_s21  ;;  %s997_s24 = sshll.u32 (!%p271_p12), %s1059_s6, 4  ;;  %s998_s24 = int_to_ptr.vmem [resolvable:$false] %s997_s24 }
  0x26   : > { %v912_v15 = vcombine.high (!%p271_p12), %v319_v14, %v319_v14  ;;  %v320_v16 = vld [vmem:[%s279_s14 + $0x28] sm:$0x33] (!%p271_p12)  ;;  %v911_v17 = vcombine.low (!%p271_p12), %v319_v14, %v319_v14  ;;  %332 = vperm.xlu0 (!%p271_p12), %977, %v322_v8   ;;  %406 = vmatpush1.bf16.msra.mxu0 (!%p271_p12), %v983_v12  ;;  %s904_s14 = sshll.u32 (!%p271_p12), %s1160_s21, 2  ;;  %s999_s25 = scalar_lea.vmem (!%p271_p12), %s998_s24, 128 }
  0x27   : > { %459 = vmatpush1.bf16.msra.mxu1 %v984_v13  ;;  %v914_v19 = vcombine.high %v320_v16, %v320_v16  ;;  %v913_v20 = vcombine.low %v320_v16, %v320_v16  ;;  %342 = vperm.xlu1 %978, %v324_v18   ;;  %s307_s16 = scalar_lea.vmem [#allocation4], %s904_s14 }
  0x28   : > { %915 = vmatprep.subr.msk.bf16.mxu0 %vm392_vm0, %v912_v15  ;;  %v394_v22 = vsel %vm392_vm0, %v911_v17, 0  ;;  %s833_s17 = sshll.u32 %s307_s16, 4  ;;  %s1237_s17 = int_to_ptr.vmem [resolvable:$true] %s833_s17 }
  0x29   : > { %918 = vmatprep.subr.msk.bf16.mxu1 %vm392_vm0, %v914_v19  ;;  %v400_v23 = vsel %vm392_vm0, %v913_v20, 0  ;;  %s993_s23 = scalar_lea.vmem %s1237_s17, 64  ;;  %p1000_p2 = scmp.lt.s32.totalorder %s1237_s17, %s998_s24 }
  0x2a   : > { %545 = vperm.xlu0 %977, %v539_v21   ;;  %408 = vmatpush1.bf16.msra.mxu0 %v394_v22  ;;  %p994_p13 = scmp.ne.s32.totalorder %s1237_s17, %s993_s23  ;;  %p1001_p3 = scmp.lt.s32.totalorder %s999_s25, %s993_s23 }
  0x2b   : > { %461 = vmatpush1.bf16.msra.mxu1 %v400_v23  ;;  %550 = vperm.xlu1 %978, %v540_v24  }
  0x2c   : > { %p995_p0 = pnand %p994_p13, %p1141_p6  ;;  %p1002_p4 = por %p1001_p3, %p1000_p2 }
  0x2d   : > { %916 = vmatmul.mubr.msk.bf16.vlgmr.msra.gmra.mrb[0].mxu0 %vm385_vm1, %v989_v25 }
  0x2e   : > { %919 = vmatmul.mubr.msk.bf16.vlgmr.msra.gmra.mrb[0].mxu1 %vm385_vm1, %v989_v25  ;;  %447 = vmatprep.mubr.bf16.mxu0 %v1057_v6  ;;  %p996_p1 = pneg %p995_p0 }
  0x2f   : > { %500 = vmatprep.mubr.bf16.mxu1 %v1057_v6  ;;  %555 = vperm.xlu0 %977, %v541_v26  }
  0x30   : > { %560 = vperm.xlu1 %978, %v542_v27   ;;  %p1003_p5 = pnand %p1002_p4, %p996_p1 }
  0x33   : > { %708 = vperm.xlu0 %977, %v702_v28  }
  0x34   : > { %713 = vperm.xlu1 %978, %v703_v29  }
  0x35   : > { %917 = vmatmul.mubr.msk.bf16.gmra.mrb[4].mxu0 %vm385_vm1, %v990_v30 }
  0x36   : > { %920 = vmatmul.mubr.msk.bf16.gmra.mrb[4].mxu1 %vm385_vm1, %v990_v30  ;;  %612 = vmatprep.mubr.bf16.mxu0 %v1057_v6  ;;  %v991_v30 = vld [vmem:[%s1282_s3] sm:$0xff]  }
  0x37   : > { %665 = vmatprep.mubr.bf16.mxu1 %v1057_v6  ;;  %718 = vperm.xlu0 %977, %v704_v31   ;;  %v992_v31 = vld [vmem:[%s1282_s3 + $0x8] sm:$0xff]  }
  0x38   : > { %723 = vperm.xlu1 %978, %v705_v32  }
  0xa1   : > { %v328_v33 = vpop.permute.xlu0 %327  ;;  %v338_v35 = vpop.permute.xlu1 %337 }
  0xa5   : > { %v333_v34 = vpop.permute.xlu0 %332 }
  0xa6   : > { %v343_v60 = vpop.permute.xlu1 %342 }
  0xa9   : > { %v546_v32 = vpop.permute.xlu0 %545 }
 0x100   : > { %v439_v36 = vpop.f32.mrb[0].mxu0 }
 0x101   : > { %v492_v37 = vpop.f32.mrb[0].mxu1  ;;  %v440_v38 = vadd.f32 %v439_v36, %v328_v33  ;;  %v441_v40 = vpop.f32.mrb[1].mxu0 }
 0x102   : > { %v493_v39 = vadd.f32 %v492_v37, %v328_v33  ;;  %v494_v41 = vpop.f32.mrb[1].mxu1  ;;  %v442_v42 = vadd.f32 %v441_v40, %v328_v33  ;;  %v443_v44 = vpop.f32.mrb[2].mxu0 }
 0x103   : > { %v495_v43 = vadd.f32 %v494_v41, %v328_v33  ;;  %v496_v45 = vpop.f32.mrb[2].mxu1  ;;  %v444_v46 = vadd.f32 %v443_v44, %v333_v34  ;;  %v445_v48 = vpop.f32.mrb[3].mxu0  ;;  %v511_v52 = vmax.f32 %v440_v38, 0.0 }
 0x104   : > { %v497_v47 = vadd.f32 %v496_v45, %v333_v34  ;;  %v498_v49 = vpop.f32.mrb[3].mxu1  ;;  %v446_v50 = vadd.f32 %v445_v48, %v333_v34  ;;  %v513_v53 = vmax.f32 %v493_v39, 0.0  ;;  %v512_v56 = vmax.f32 %v442_v42, 0.0  ;;  %v551_v33 = vpop.permute.xlu1 %550 }
 0x105   : > { %v499_v51 = vadd.f32 %v498_v49, %v333_v34  ;;  %v515_v54 = vmax.f32 %v444_v46, 0.0  ;;  %v514_v57 = vmax.f32 %v495_v43, 0.0  ;;  %v556_v34 = vpop.permute.xlu0 %555 }
 0x106   : > { %v517_v55 = vmax.f32 %v497_v47, 0.0  ;;  %v516_v58 = vmax.f32 %v446_v50, 0.0 }
 0x107   : > { %v518_v59 = vmax.f32 %v499_v51, 0.0  ;;  %v531_v61 = vpack.c.bf16 %v515_v54, %v511_v52 }
 0x108   : > { %v533_v62 = vpack.c.bf16 %v517_v55, %v513_v53  ;;  %v532_v63 = vpack.c.bf16 %v516_v58, %v512_v56  ;;  %v449_v1 = vpop.f32.mrb[4].mxu0 }
 0x109   : > { %v534_v0 = vpack.c.bf16 %v518_v59, %v514_v57  ;;  %v502_v2 = vpop.f32.mrb[4].mxu1  ;;  %v450_v3 = vadd.f32 %v449_v1, %v338_v35  ;;  %v451_v5 = vpop.f32.mrb[5].mxu0 }
 0x10a   : > { %v503_v4 = vadd.f32 %v502_v2, %v338_v35  ;;  %v504_v7 = vpop.f32.mrb[5].mxu1  ;;  %v452_v8 = vadd.f32 %v451_v5, %v338_v35  ;;  %v453_v10 = vpop.f32.mrb[6].mxu0  ;;  %580 = vmatprep.subr.bf16.mxu0 %v532_v63 }
 0x10b   : > { %v505_v9 = vadd.f32 %v504_v7, %v338_v35  ;;  %v506_v11 = vpop.f32.mrb[6].mxu1  ;;  %633 = vmatprep.subr.bf16.mxu1 %v534_v0  ;;  %v454_v12 = vadd.f32 %v453_v10, %v343_v60  ;;  %v455_v14 = vpop.f32.mrb[7].mxu0  ;;  %581 = vmatpush1.bf16.msra.mxu0 %v531_v61  ;;  %v519_v18 = vmax.f32 %v450_v3, 0.0 }
 0x10c   : > { %v507_v13 = vadd.f32 %v506_v11, %v343_v60  ;;  %v508_v15 = vpop.f32.mrb[7].mxu1  ;;  %634 = vmatpush1.bf16.msra.mxu1 %v533_v62  ;;  %v456_v16 = vadd.f32 %v455_v14, %v343_v60  ;;  %v521_v19 = vmax.f32 %v503_v4, 0.0  ;;  %v520_v22 = vmax.f32 %v452_v8, 0.0  ;;  %v561_v35 = vpop.permute.xlu1 %560 }
 0x10d   : > { %v509_v17 = vadd.f32 %v508_v15, %v343_v60  ;;  %v523_v20 = vmax.f32 %v454_v12, 0.0  ;;  %v522_v23 = vmax.f32 %v505_v9, 0.0  ;;  %v709_v57 = vpop.permute.xlu0 %708 }
 0x10e   : > { %v525_v21 = vmax.f32 %v507_v13, 0.0  ;;  %v524_v24 = vmax.f32 %v456_v16, 0.0 }
 0x10f   : > { %v526_v25 = vmax.f32 %v509_v17, 0.0  ;;  %v535_v26 = vpack.c.bf16 %v523_v20, %v519_v18 }
 0x110   : > { %v537_v27 = vpack.c.bf16 %v525_v21, %v521_v19  ;;  %v536_v28 = vpack.c.bf16 %v524_v24, %v520_v22  ;;  %v714_v58 = vpop.permute.xlu1 %713 }
 0x111   : > { %v538_v29 = vpack.c.bf16 %v526_v25, %v522_v23 }
 0x112   : > { %582 = vmatprep.subr.bf16.mxu0 %v536_v28 }
 0x113   : > { %635 = vmatprep.subr.bf16.mxu1 %v538_v29  ;;  %583 = vmatpush1.bf16.msra.mxu0 %v535_v26  ;;  %v719_v26 = vpop.permute.xlu0 %718 }
 0x114   : > { %636 = vmatpush1.bf16.msra.mxu1 %v537_v27 }
 0x116   : > { %923 = vmatmul.mubr.msk.bf16.vlgmr.msra.gmra.mrb[8].mxu0 %vm573_vm2, %v991_v30 }
 0x117   : > { %925 = vmatmul.mubr.msk.bf16.vlgmr.msra.gmra.mrb[8].mxu1 %vm573_vm2, %v991_v30  ;;  %622 = vmatprep.mubr.bf16.mxu0 %v1057_v6 }
 0x118   : > { %675 = vmatprep.mubr.bf16.mxu1 %v1057_v6 }
 0x11e   : > { %924 = vmatmul.mubr.msk.bf16.gmra.mrb[12].mxu0 %vm573_vm2, %v992_v31 }
 0x11f   : > { %926 = vmatmul.mubr.msk.bf16.gmra.mrb[12].mxu1 %vm573_vm2, %v992_v31 }
 0x1e9   : > { %v614_v36 = vpop.f32.mrb[8].mxu0 }
 0x1ea   : > { %v667_v37 = vpop.f32.mrb[8].mxu1  ;;  %v615_v38 = vadd.f32 %v614_v36, %v546_v32  ;;  %v616_v40 = vpop.f32.mrb[9].mxu0 }
 0x1eb   : > { %v668_v39 = vadd.f32 %v667_v37, %v546_v32  ;;  %v669_v41 = vpop.f32.mrb[9].mxu1  ;;  %v617_v42 = vadd.f32 %v616_v40, %v546_v32  ;;  %v618_v44 = vpop.f32.mrb[10].mxu0 }
 0x1ec   : > { %v670_v43 = vadd.f32 %v669_v41, %v546_v32  ;;  %v671_v6 = vpop.f32.mrb[10].mxu1  ;;  %v686_v45 = vmax.f32 %v615_v38, 0.0  ;;  %v619_v47 = vadd.f32 %v618_v44, %v551_v33  ;;  %v620_v49 = vpop.f32.mrb[11].mxu0 }
 0x1ed   : > { %v688_v46 = vmax.f32 %v668_v39, 0.0  ;;  %v672_v48 = vadd.f32 %v671_v6, %v551_v33  ;;  %v673_v50 = vpop.f32.mrb[11].mxu1  ;;  %v687_v51 = vmax.f32 %v617_v42, 0.0  ;;  %v621_v53 = vadd.f32 %v620_v49, %v551_v33  ;;  %v724_v37 = vpop.permute.xlu1 %723 }
 0x1ee   : > { %v689_v52 = vmax.f32 %v670_v43, 0.0  ;;  %v674_v54 = vadd.f32 %v673_v50, %v551_v33  ;;  %v690_v55 = vmax.f32 %v619_v47, 0.0  ;;  %v726_v61 = vmul.f32 %v709_v57, %v686_v45 }
 0x1ef   : > { %v692_v56 = vmax.f32 %v672_v48, 0.0  ;;  %v691_v59 = vmax.f32 %v621_v53, 0.0  ;;  %v728_v62 = vmul.f32 %v709_v57, %v688_v46  ;;  %v727_v1 = vmul.f32 %v709_v57, %v687_v51 }
 0x1f0   : > { %v693_v60 = vmax.f32 %v674_v54, 0.0  ;;  %v730_v63 = vmul.f32 %v714_v58, %v690_v55  ;;  %v729_v2 = vmul.f32 %v709_v57, %v689_v52 }
 0x1f1   : > { %v732_v0 = vmul.f32 %v714_v58, %v692_v56  ;;  %v731_v3 = vmul.f32 %v714_v58, %v691_v59  ;;  %v624_v5 = vpop.f32.mrb[12].mxu0 }
 0x1f2   : > { %v733_v4 = vmul.f32 %v714_v58, %v693_v60  ;;  %v677_v7 = vpop.f32.mrb[12].mxu1  ;;  %v742_v8 = vadd.f32 %v730_v63, %v726_v61  ;;  %v625_v10 = vadd.f32 %v624_v5, %v556_v34  ;;  %v626_v12 = vpop.f32.mrb[13].mxu0  ;;  %v1058_v63 = vmov 1966171168  }
 0x1f3   : > { %v760_v9 = vadd.f32 %v732_v0, %v728_v62  ;;  %v678_v11 = vadd.f32 %v677_v7, %v556_v34  ;;  %v679_v13 = vpop.f32.mrb[13].mxu1  ;;  %v751_v14 = vadd.f32 %v731_v3, %v727_v1  ;;  %v627_v16 = vadd.f32 %v626_v12, %v556_v34  ;;  %v628_v18 = vpop.f32.mrb[14].mxu0 }
 0x1f4   : > { %v769_v15 = vadd.f32 %v733_v4, %v729_v2  ;;  %v680_v17 = vadd.f32 %v679_v13, %v556_v34  ;;  %v681_v19 = vpop.f32.mrb[14].mxu1  ;;  %v694_v20 = vmax.f32 %v625_v10, 0.0  ;;  %v629_v22 = vadd.f32 %v628_v18, %v561_v35  ;;  %v630_v24 = vpop.f32.mrb[15].mxu0 }
 0x1f5   : > { %v696_v21 = vmax.f32 %v678_v11, 0.0  ;;  %v682_v23 = vadd.f32 %v681_v19, %v561_v35  ;;  %v683_v25 = vpop.f32.mrb[15].mxu1  ;;  %v695_v27 = vmax.f32 %v627_v16, 0.0  ;;  %v631_v29 = vadd.f32 %v630_v24, %v561_v35 }
 0x1f6   : > { %v697_v28 = vmax.f32 %v680_v17, 0.0  ;;  %v684_v30 = vadd.f32 %v683_v25, %v561_v35  ;;  %v734_v31 = vmul.f32 %v719_v26, %v694_v20  ;;  %v698_v33 = vmax.f32 %v629_v22, 0.0 }
 0x1f7   : > { %v736_v32 = vmul.f32 %v719_v26, %v696_v21  ;;  %v700_v36 = vmax.f32 %v682_v23, 0.0  ;;  %v735_v38 = vmul.f32 %v719_v26, %v695_v27  ;;  %v699_v39 = vmax.f32 %v631_v29, 0.0 }
 0x1f8   : > { %v737_v34 = vmul.f32 %v719_v26, %v697_v28  ;;  %v701_v40 = vmax.f32 %v684_v30, 0.0  ;;  %v743_v41 = vadd.f32 %v742_v8, %v734_v31  ;;  %v738_v43 = vmul.f32 %v724_v37, %v698_v33 }
 0x1f9   : > { %v761_v42 = vadd.f32 %v760_v9, %v736_v32  ;;  %v740_v44 = vmul.f32 %v724_v37, %v700_v36  ;;  %v752_v6 = vadd.f32 %v751_v14, %v735_v38  ;;  %v739_v46 = vmul.f32 %v724_v37, %v699_v39 }
 0x1fa   : > { %v770_v45 = vadd.f32 %v769_v15, %v737_v34  ;;  %v741_v47 = vmul.f32 %v724_v37, %v701_v40  ;;  %v744_v48 = vadd.f32 %v743_v41, %v738_v43  ;;  %v791_v0 = vunpack.c.l.s4 %v1058_v63 }
 0x1fb   : > { %v762_v49 = vadd.f32 %v761_v42, %v740_v44  ;;  %v753_v35 = vadd.f32 %v752_v6, %v739_v46  ;;  %v793_v1 = vlaneseq  ;;  %v779_v8 = vstv %s778_s10 }
 0x1fc   : > { %v771_v50 = vadd.f32 %v770_v45, %v741_v47  ;;  %v745_v51 = vrot.slane %v744_v48, 4  ;;  %v792_v12 = vunpack.c.0.s8 %v791_v0 }
 0x1fd   : > { %v763_v52 = vrot.slane %v762_v49, 4  ;;  %v754_v53 = vrot.slane %v753_v35, 4  ;;  %v794_v13 = vshrl.u32 %v793_v1, 7  ;;  %vm815_vm3 = vcmp.lt.s32.totalorder %v793_v1, 512 }
 0x1fe   : > { %v772_v54 = vrot.slane %v771_v50, 4  ;;  %v746_v55 = vadd.f32 %v745_v51, %v744_v48 }
 0x1ff   : > { %v764_v56 = vadd.f32 %v763_v52, %v762_v49  ;;  %v755_v57 = vadd.f32 %v754_v53, %v753_v35  ;;  %v795_v22 = vsub.s32 %v792_v12, %v794_v13 }
 0x200   : > { %v773_v58 = vadd.f32 %v772_v54, %v771_v50  ;;  %v747_v59 = vrot.slane %v746_v55, 2 }
 0x201   : > { %v765_v60 = vrot.slane %v764_v56, 2  ;;  %v756_v61 = vrot.slane %v755_v57, 2 }
 0x202   : > { %v774_v62 = vrot.slane %v773_v58, 2  ;;  %v748_v2 = vadd.f32 %v747_v59, %v746_v55 }
 0x203   : > { %v766_v3 = vadd.f32 %v765_v60, %v764_v56  ;;  %v757_v4 = vadd.f32 %v756_v61, %v755_v57 }
 0x204   : > { %v775_v5 = vadd.f32 %v774_v62, %v773_v58  ;;  %v749_v7 = vrot.slane %v748_v2, 1 }
 0x205   : > { %v767_v9 = vrot.slane %v766_v3, 1  ;;  %v758_v10 = vrot.slane %v757_v4, 1 }
 0x206   : > { %v776_v11 = vrot.slane %v775_v5, 1  ;;  %v750_v14 = vadd.f32 %v749_v7, %v748_v2 }
 0x207   : > { %v768_v15 = vadd.f32 %v767_v9, %v766_v3  ;;  %v759_v16 = vadd.f32 %v758_v10, %v757_v4 }
 0x208   : > { %v777_v17 = vadd.f32 %v776_v11, %v775_v5  ;;  %v780_v18 = vadd.f32 %v779_v8, %v750_v14 }
 0x209   : > { %v782_v19 = vadd.f32 %v779_v8, %v768_v15  ;;  %v781_v20 = vadd.f32 %v779_v8, %v759_v16 }
 0x20a   : > { %v783_v21 = vadd.f32 %v779_v8, %v777_v17 }
 0x20b   : > { %v788_v23 = vcombine.low %v780_v18, %v781_v20 }
 0x20c   : > { %v789_v24 = vcombine.low %v782_v19, %v783_v21 }
 0x20d   : > { %v796_v25 = vrot.slane %v788_v23, %v795_v22 }
 0x20e   : > { %v803_v26 = vrot.slane %v789_v24, %v795_v22 }
 0x210   : > { %v804_v27 = vcombine.low %v796_v25, %v803_v26 }
 0x212   : > { %v811_v28 = vrot.slane %v804_v27, %v795_v22 }
 0x214   : > { %817 = vst.msk [vmem:[%s307_s16] sm:$0xf] %vm815_vm3, %v811_v28 }
 0x215   : > { %1006 = shalt.err (!%p1003_p5)
}
 0x216   : > { %s1007_s21 = scalar_lea.hbm %s1235_s20, 64  ;;  %s1011_s10 = scalar_lea.hbm %s1286_s7, 128 }
 0x217   : > { %p1008_p7 = scmp.ne.s32.totalorder %s1235_s20, %s1007_s21  ;;  %p1012_p12 = scmp.lt.u32.totalorder %s1235_s20, %s1286_s7 }
 0x218   : > { %p1013_p13 = scmp.lt.u32.totalorder %s1011_s10, %s1007_s21  ;;  %p1015_p1 = scmp.lt.u32.totalorder %s1007_s21, %s1235_s20 }
 0x219   : > { %p1009_p10 = pnand %p1008_p7, %p1141_p6 }
 0x21a   : > { %p1014_p0 = por %p1013_p13, %p1012_p12 }
 0x21b   : > { %p1010_p11 = pneg %p1009_p10 }
 0x21c   : > { %p1016_p2 = por %p1015_p1, %p1014_p0 }
 0x21e   : > { %p1017_p3 = pnand %p1016_p2, %p1010_p11 }
 0x220   : > { %1020 = shalt.err (!%p1017_p3)
}
 0x221   : > { %936 = dma.vmem_to_hbm [thread:$0]  (%p1141_p6), %s1237_s17, 64, %s1235_s20, %s819_s22  }
 0x222 PF: > { %s845_s16 = sand.u32 1, %s1043_s26   ;;  %p939_p4 = pnand %p900_p9, %p1145_p8 }
 0x223   : > { %s846_s18 = scalar_lea.sflag [#allocation5], %s845_s16 }
 0x224   : > { %1038 = dma.done.wait (!%p939_p4), %s846_s18, 64  }
 0x225   : > { %1040 = vsyncadd (!%p939_p4), %s846_s18, 4294967232  ;;  %p18_p5 = scmp.ge.s32.totalorder %s1126_s8, 4   ;;  %s1289_s26 = smov %s1047_s27 }
 0x226   : > { %s1290_s27 = smov %s1051_s28  ;;  %s1291_s28 = smov %s1139_s11 }
 0x227   : > { %s1292_s29 = smov %s1126_s8  ;;  %20 = sbr.rel (!%p18_p5) target bundleno = 5 (0x5), region = 111 }
 0x22e   :  { %851 = vsyncpa [#allocation5], 1 }
 0x22f   :  { %853 = vsyncpa [#allocation5 + $0x1], 1 }

</bundles_post_ra>
